<compile_context>
chip_gen: v5e
topology: v5e:2x2
jax: 0.10.0
libtpu: 0.0.40
codegen_flags: <defaults>
</compile_context>

<pallas_src>
import jax
import jax.numpy as jnp
from jax.experimental import pallas as pl
from jax.experimental.pallas import tpu as pltpu


def _vmem_capacity_bytes():
    """Per-core VMEM capacity; fall back to the smallest generation (v7x: 64 MiB)."""
    try:
        return int(pltpu.get_tpu_info().vmem_capacity_bytes)
    except Exception:
        return 64 * 1024 * 1024


def _lane_dense_view(shape, size):
    """Return (rows, cols) for a copy-free lane-dense 2-D view, or None."""
    if size == 0:
        return None
    if len(shape) >= 1 and shape[-1] >= 128 and shape[-1] % 128 == 0:
        return size // shape[-1], shape[-1]
    # Ragged last dim: flatten and pick the widest multiple of 128 that divides
    # the total element count (contiguous reshape is free in XLA — no copy).
    for cols in (8192, 4096, 2048, 1024, 512, 256, 128):
        if size % cols == 0:
            return size // cols, cols
    return None


def _choose_tiles(rows, cols, per_elem_bytes, sub_align, target_bytes):
    """Pick (tm, tc) so one block is ~target_bytes across input + output."""
    if cols * sub_align * per_elem_bytes <= target_bytes:
        tc = cols                                        # full lane extent
        tm = target_bytes // (cols * per_elem_bytes)
        tm = max(sub_align, (tm // sub_align) * sub_align)
    else:
        tm = sub_align                                   # very wide: tile cols too
        tc = target_bytes // (tm * per_elem_bytes)
        tc = max(128, min((tc // 128) * 128, cols))
    if tm >= rows:
        tm = rows                                        # full dim is always legal
    return tm, tc


def _residual_fused(fn, x, *, tm=None, tc=None, min_pallas_bytes=2 << 20):
    """y = fn(x) + x with `fn` fused into a single Pallas elementwise kernel.

    `fn` must be a traceable, shape-preserving, per-element JAX callable.
    Falls back to plain JAX whenever fusion is impossible or unprofitable.
    """
    try:
        out_aval = jax.eval_shape(lambda v: fn(v) + v, x)
    except Exception:
        return fn(x) + x
    if out_aval.shape != x.shape:
        # TODO(synk): fn is not shape-preserving -> cannot be applied block-wise.
        return fn(x) + x

    in_isz = jnp.dtype(x.dtype).itemsize
    out_isz = jnp.dtype(out_aval.dtype).itemsize
    per_elem = in_isz + out_isz

    # Tiny tensors: pallas_call launch + ~0.35 us/step overhead dominates; XLA's
    # fused elementwise add is strictly faster there.
    if x.size * per_elem < min_pallas_bytes:
        return fn(x) + x

    view = _lane_dense_view(x.shape, x.size)
    if view is None:
        # Total size not a multiple of 128: a lane-dense view would need a padded
        # copy (extra HBM traffic), so let XLA fuse instead.
        return fn(x) + x
    rows, cols = view
    xf = x.reshape(rows, cols)

    vmem_cap = _vmem_capacity_bytes()
    # ~4 MiB blocks on the 64 MiB part (v7x), ~8 MiB on 128 MiB parts (v5e/v6e).
    target = max(1 << 20, min(8 << 20, vmem_cap // 16))
    sub_align = max(8, 32 // min(in_isz, out_isz, 4))    # f32: 8, bf16: 16, int8: 32

    if tm is None or tc is None:
        auto_tm, auto_tc = _choose_tiles(rows, cols, per_elem, sub_align, target)
        tm = auto_tm if tm is None else tm
        tc = auto_tc if tc is None else tc
    tm = min(tm, rows)
    tc = min(tc, cols)

    grid = (pl.cdiv(rows, tm), pl.cdiv(cols, tc))
    spec = pl.BlockSpec((tm, tc), lambda i, j: (i, j))

    # Right-sized scoped VMEM: in + out blocks double-buffered plus headroom for
    # fn's block-sized temporaries — NOT "capacity - 8 MiB".
    block_bytes = tm * tc * per_elem
    vmem_limit = int(min(max(3 * block_bytes + (4 << 20), 16 << 20),
                         vmem_cap - (4 << 20)))

    def kernel(x_ref, y_ref):
        xb = x_ref[...]
        y_ref[...] = (fn(xb) + xb).astype(y_ref.dtype)

    y = pl.pallas_call(
        kernel,
        out_shape=jax.ShapeDtypeStruct((rows, cols), out_aval.dtype),
        grid=grid,
        in_specs=[spec],
        out_specs=spec,
        compiler_params=pltpu.CompilerParams(
            # Both grid axes are independent; "parallel" lets them shard across
            # the two TensorCores on v7x (no-op on single-TC v5e/v6e).
            # TODO(synk): if a v7x profile shows one TC doing all blocks, switch
            # the row axis to pltpu.CORE_PARALLEL.
            dimension_semantics=("parallel", "parallel"),
            vmem_limit_bytes=vmem_limit,
        ),
        cost_estimate=pl.CostEstimate(
            flops=2 * rows * cols,            # advisory; fn's exact flops unknown
            transcendentals=0,
            bytes_accessed=rows * cols * per_elem,
        ),
    )(xf)

    return y.reshape(x.shape)


class Residual:
    """JAX/Pallas equivalent of the PyTorch Residual module: fn(x, **kwargs) + x.

    elementwise=True  -> fn is fused into one Pallas kernel (2x HBM traffic).
    elementwise=False -> arbitrary sub-module fn (attention/MLP/...): the residual
                         add is left to XLA, which fuses it into fn's epilogue.
    """

    def __init__(self, fn, *, elementwise=False, min_pallas_bytes=2 << 20):
        self.fn = fn
        self.elementwise = elementwise
        self.min_pallas_bytes = min_pallas_bytes

    def __call__(self, x, **kwargs):
        fn = (lambda v: self.fn(v, **kwargs)) if kwargs else self.fn
        if self.elementwise:
            return _residual_fused(fn, x, min_pallas_bytes=self.min_pallas_bytes)
        # TODO(synk): non-elementwise fn has no profitable Pallas fusion here; an
        # un-fused Pallas add would re-read fn(x) from HBM (>=4x traffic) so the
        # add is left to XLA epilogue fusion instead.
        return fn(x) + x


if __name__ == "__main__":
    # Small, lane-dense demo shape: D = 256 (multiple of 128), rows = 2 * 100 = 200.
    B, N, D = 2, 100, 256
    key = jax.random.PRNGKey(0)
    x = jax.random.normal(key, (B, N, D), dtype=jnp.float32)

    # Elementwise `fn` standing in for the wrapped module (fused into the kernel).
    fn = lambda v: jnp.tanh(v) * 0.5 + 0.25 * v
    ref = fn(x) + x

    # Fused Pallas path; threshold overridden so the kernel runs at this small size.
    mod = Residual(fn, elementwise=True, min_pallas_bytes=0)
    y = jax.block_until_ready(mod(x))
    assert y.shape == x.shape and y.dtype == x.dtype
    assert jnp.allclose(y, ref, atol=1e-6, rtol=1e-6), "mismatch (auto tiles)"

    # Forced small tiles -> 2-D grid with partial tail blocks on both axes.
    y2 = jax.block_until_ready(_residual_fused(fn, x, tm=64, tc=128, min_pallas_bytes=0))
    assert jnp.allclose(y2, ref, atol=1e-6, rtol=1e-6), "mismatch (forced tiles)"

    # bf16 path exercises dtype-aware sublane alignment (tm multiple of 16).
    xb = x.astype(jnp.bfloat16)
    yb = jax.block_until_ready(_residual_fused(fn, xb, min_pallas_bytes=0))
    refb = (fn(xb) + xb).astype(jnp.float32)
    assert jnp.allclose(yb.astype(jnp.float32), refb, atol=2e-2, rtol=2e-2), "mismatch (bf16)"

    # Ragged last dim (96 not a multiple of 128) but total size % 128 == 0:
    # re-viewed as a copy-free lane-dense (3, 128) slab.
    xr = jax.random.normal(jax.random.PRNGKey(1), (4, 96), dtype=jnp.float32)
    yr = jax.block_until_ready(_residual_fused(fn, xr, min_pallas_bytes=0))
    assert yr.shape == xr.shape
    assert jnp.allclose(yr, fn(xr) + xr, atol=1e-6, rtol=1e-6), "mismatch (ragged)"

    # Non-elementwise fn: plain JAX fallback (XLA fuses the residual add).
    mod2 = Residual(lambda v: jnp.flip(v, axis=1), elementwise=False)
    y3 = jax.block_until_ready(mod2(x))
    assert jnp.allclose(y3, jnp.flip(x, axis=1) + x), "mismatch (fallback)"

    print("KERNEL_OK")
</pallas_src>

<mosaic_0001>
module attributes {stable_mosaic.version = 11 : i64} {
  func.func @kernel(%arg0: i32, %arg1: i32, %arg2: memref<200x256xf32, #tpu.memory_space<vmem>>, %arg3: memref<200x256xf32, #tpu.memory_space<vmem>>) attributes {dimension_semantics = [#tpu.dimension_semantics<parallel>, #tpu.dimension_semantics<parallel>], iteration_bounds = array<i64: 1, 1>, scalar_prefetch = 0 : i64, scratch_operands = 0 : i64, tpu.core_type = #tpu.core_type<tc>, window_params = [{transform_indices = @transform_0, window_bounds = array<i64: 200, 256>}, {transform_indices = @transform_1, window_bounds = array<i64: 200, 256>}]} {
    %c0 = arith.constant 0 : index
    %c0_0 = arith.constant 0 : index
    %0 = vector.load %arg2[%c0, %c0_0] : memref<200x256xf32, #tpu.memory_space<vmem>>, vector<200x256xf32>
    %1 = math.tanh %0 : vector<200x256xf32>
    %cst = arith.constant 5.000000e-01 : f32
    %2 = vector.broadcast %cst : f32 to vector<200x256xf32>
    %3 = arith.mulf %1, %2 : vector<200x256xf32>
    %cst_1 = arith.constant 2.500000e-01 : f32
    %4 = vector.broadcast %cst_1 : f32 to vector<200x256xf32>
    %5 = arith.mulf %4, %0 : vector<200x256xf32>
    %6 = arith.addf %3, %5 : vector<200x256xf32>
    %7 = arith.addf %6, %0 : vector<200x256xf32>
    %c0_2 = arith.constant 0 : index
    %c0_3 = arith.constant 0 : index
    %8 = vector.load %arg3[%c0_2, %c0_3] : memref<200x256xf32, #tpu.memory_space<vmem>>, vector<200x256xf32>
    tpu.vector_store %arg3[%c0_2, %c0_3], %7 {strides = array<i32>} : memref<200x256xf32, #tpu.memory_space<vmem>>, vector<200x256xf32>,
    return
  }
  func.func @transform_0(%arg0: i32, %arg1: i32) -> (i32, i32) {
    %c0_i32 = arith.constant 0 : i32
    return %arg0, %arg1 : i32, i32
  }
  func.func @transform_1(%arg0: i32, %arg1: i32) -> (i32, i32) {
    %c0_i32 = arith.constant 0 : i32
    return %arg0, %arg1 : i32, i32
  }
}

</mosaic_0001>

<bundles_post_ra>
// kernel: tpu_custom_call.1
= control target key start
LH: loop header
LB: loop body
LE: loop exit
PB: predicated region body
PF: predicated region fallthrough
CT: control target
= control target key end

     0   :  { %6 = vsyncpa [#allocation3], 0  ;;  %s880_s0 = inlined_call_operand.hbm [shape: f32[200,256], index: 0, kind: input, shape index: {}]   ;;  %s881_s1 = inlined_call_operand.hbm [shape: f32[200,256], index: 1, kind: output, shape index: {}]  }
   0x1   :  { %7 = vsyncpa [#allocation4], 0  ;;  %s12_s8 = sshll.u32 %s880_s0, 4  ;;  %s550_s9 = smov [#allocation2]   ;;  %s13_s8 = int_to_ptr.hbm [resolvable:$true] %s12_s8 }
   0x2   :  { %s14_s10 = sshll.u32 %s550_s9, 4  ;;  %s551_s11 = smov 256   ;;  %s15_s10 = int_to_ptr.vmem [resolvable:$true] %s14_s10 }
   0x3   :  { %s552_s12 = smov 16  }
   0x4   :  { %20 = dma.hbm_to_vmem [thread:$0]  %s13_s8, 6400, %s15_s10, [#allocation3], %s551_s11, %s551_s11, %s552_s12  }
   0x5   :  { %546 = dma.done.wait [#allocation3], 6400  }
   0x6   :  { %547 = vsyncadd [#allocation3], 4294960896  ;;  %v570_v0 = vld [vmem:[#allocation2] sm:$0xff]  ;;  %v572_v1 = vld [vmem:[#allocation2 + $0x8] sm:$0xff]  ;;  %s553_s0 = smov [#allocation5]   ;;  %s381_s16 = sshll.u32 %s881_s1, 4  ;;  %s382_s16 = int_to_ptr.hbm [resolvable:$true] %s381_s16 }
   0x7   :  { %v574_v2 = vld [vmem:[#allocation2 + $0x10] sm:$0xff]  ;;  %398 = vtanh.f32 %v570_v0  ;;  %v175_v3 = vmul.f32 0.25, %v570_v0  ;;  %v578_v4 = vld [vmem:[#allocation2 + $0x18] sm:$0xff]  ;;  %v176_v5 = vmul.f32 0.25, %v572_v1  ;;  %v588_v8 = vld [vmem:[#allocation2 + $0x20] sm:$0xff]  ;;  %s379_s13 = sshll.u32 %s553_s0, 4  ;;  %s380_s13 = int_to_ptr.vmem [resolvable:$true] %s379_s13 }
   0x8   :  { %400 = vtanh.f32 %v572_v1  ;;  %v583_v6 = vmul.f32 0.25, %v574_v2  ;;  %v586_v7 = vmul.f32 0.25, %v578_v4  ;;  %v590_v9 = vld [vmem:[#allocation2 + $0x28] sm:$0xff]  ;;  %v592_v10 = vld [vmem:[#allocation2 + $0x30] sm:$0xff]  ;;  %v596_v11 = vmul.f32 0.25, %v588_v8  ;;  %v604_v14 = vld [vmem:[#allocation2 + $0x38] sm:$0xff] }
   0x9   :  { %402 = vtanh.f32 %v574_v2  ;;  %v599_v12 = vmul.f32 0.25, %v590_v9  ;;  %v602_v13 = vmul.f32 0.25, %v592_v10  ;;  %v606_v15 = vld [vmem:[#allocation2 + $0x40] sm:$0xff]  ;;  %v608_v16 = vld [vmem:[#allocation2 + $0x48] sm:$0xff]  ;;  %v612_v17 = vmul.f32 0.25, %v604_v14  ;;  %v620_v20 = vld [vmem:[#allocation2 + $0x50] sm:$0xff] }
   0xa   :  { %404 = vtanh.f32 %v578_v4  ;;  %v615_v18 = vmul.f32 0.25, %v606_v15  ;;  %v618_v19 = vmul.f32 0.25, %v608_v16  ;;  %v622_v21 = vld [vmem:[#allocation2 + $0x58] sm:$0xff]  ;;  %v624_v22 = vld [vmem:[#allocation2 + $0x60] sm:$0xff]  ;;  %v628_v23 = vmul.f32 0.25, %v620_v20  ;;  %v636_v26 = vld [vmem:[#allocation2 + $0x68] sm:$0xff] }
   0xb   :  { %406 = vtanh.f32 %v588_v8  ;;  %v631_v24 = vmul.f32 0.25, %v622_v21  ;;  %v634_v25 = vmul.f32 0.25, %v624_v22  ;;  %v638_v27 = vld [vmem:[#allocation2 + $0x70] sm:$0xff]  ;;  %v640_v28 = vld [vmem:[#allocation2 + $0x78] sm:$0xff]  ;;  %v644_v29 = vmul.f32 0.25, %v636_v26  ;;  %v652_v32 = vld [vmem:[#allocation2 + $0x80] sm:$0xff] }
   0xc   :  { %408 = vtanh.f32 %v590_v9  ;;  %v647_v30 = vmul.f32 0.25, %v638_v27  ;;  %v650_v31 = vmul.f32 0.25, %v640_v28  ;;  %v654_v33 = vld [vmem:[#allocation2 + $0x88] sm:$0xff]  ;;  %v656_v34 = vld [vmem:[#allocation2 + $0x90] sm:$0xff]  ;;  %v660_v36 = vmul.f32 0.25, %v652_v32  ;;  %v668_v39 = vld [vmem:[#allocation2 + $0x98] sm:$0xff] }
   0xd   :  { %v399_v35 = vpop.eup %398  ;;  %410 = vtanh.f32 %v592_v10  ;;  %v663_v37 = vmul.f32 0.25, %v654_v33  ;;  %v666_v38 = vmul.f32 0.25, %v656_v34  ;;  %v670_v40 = vld [vmem:[#allocation2 + $0xa0] sm:$0xff]  ;;  %v674_v43 = vmul.f32 0.25, %v668_v39  ;;  %v679_v45 = vld [vmem:[#allocation2 + $0xa8] sm:$0xff]  ;;  %v681_v46 = vld [vmem:[#allocation2 + $0xb0] sm:$0xff] }
   0xe   :  { %v401_v41 = vpop.eup %400  ;;  %v125_v42 = vmul.f32 0.5, %v399_v35  ;;  %412 = vtanh.f32 %v604_v14  ;;  %v677_v44 = vmul.f32 0.25, %v670_v40  ;;  %v685_v49 = vmul.f32 0.25, %v679_v45  ;;  %v690_v51 = vld [vmem:[#allocation2 + $0xb8] sm:$0xff]  ;;  %v696_v56 = vld [vmem:[#allocation2 + $0xc0] sm:$0xff] }
   0xf   :  { %v403_v47 = vpop.eup %402  ;;  %v126_v48 = vmul.f32 0.5, %v401_v41  ;;  %414 = vtanh.f32 %v606_v15  ;;  %v688_v50 = vmul.f32 0.25, %v681_v46  ;;  %v694_v55 = vmul.f32 0.25, %v690_v51 }
  0x10   :  { %v405_v52 = vpop.eup %404  ;;  %v225_v53 = vadd.f32 %v175_v3, %v125_v42  ;;  %v127_v54 = vmul.f32 0.5, %v403_v47  ;;  %416 = vtanh.f32 %v608_v16  ;;  %v700_v60 = vmul.f32 0.25, %v696_v56 }
  0x11   :  { %v407_v57 = vpop.eup %406  ;;  %v226_v58 = vadd.f32 %v176_v5, %v126_v48  ;;  %v128_v59 = vmul.f32 0.5, %v405_v52  ;;  %418 = vtanh.f32 %v620_v20 }
  0x12   :  { %v409_v61 = vpop.eup %408  ;;  %v275_v62 = vadd.f32 %v225_v53, %v570_v0  ;;  %v227_v63 = vadd.f32 %v583_v6, %v127_v54  ;;  %v129_v3 = vmul.f32 0.5, %v407_v57  ;;  %420 = vtanh.f32 %v622_v21 }
  0x13   :  { %v411_v35 = vpop.eup %410  ;;  %v276_v41 = vadd.f32 %v226_v58, %v572_v1  ;;  %v228_v42 = vadd.f32 %v586_v7, %v128_v59  ;;  %v130_v5 = vmul.f32 0.5, %v409_v61  ;;  %422 = vtanh.f32 %v624_v22 }
  0x14   :  { %v413_v47 = vpop.eup %412  ;;  %325 = vst [vmem:[#allocation5] sm:$0xff] %v275_v62  ;;  %v277_v48 = vadd.f32 %v227_v63, %v574_v2  ;;  %v229_v52 = vadd.f32 %v596_v11, %v129_v3  ;;  %v131_v0 = vmul.f32 0.5, %v411_v35  ;;  %424 = vtanh.f32 %v636_v26 }
  0x15   :  { %v415_v6 = vpop.eup %414  ;;  %326 = vst [vmem:[#allocation5 + $0x8] sm:$0xff] %v276_v41  ;;  %v278_v53 = vadd.f32 %v228_v42, %v578_v4  ;;  %v230_v1 = vadd.f32 %v599_v12, %v130_v5  ;;  %v132_v54 = vmul.f32 0.5, %v413_v47  ;;  %426 = vtanh.f32 %v638_v27 }
  0x16   :  { %v417_v7 = vpop.eup %416  ;;  %327 = vst [vmem:[#allocation5 + $0x10] sm:$0xff] %v277_v48  ;;  %v279_v57 = vadd.f32 %v229_v52, %v588_v8  ;;  %v231_v2 = vadd.f32 %v602_v13, %v131_v0  ;;  %v133_v58 = vmul.f32 0.5, %v415_v6  ;;  %428 = vtanh.f32 %v640_v28 }
  0x17   :  { %v419_v11 = vpop.eup %418  ;;  %328 = vst [vmem:[#allocation5 + $0x18] sm:$0xff] %v278_v53  ;;  %v280_v59 = vadd.f32 %v230_v1, %v590_v9  ;;  %v232_v4 = vadd.f32 %v612_v17, %v132_v54  ;;  %v134_v61 = vmul.f32 0.5, %v417_v7  ;;  %430 = vtanh.f32 %v652_v32  ;;  %v743_v54 = vld [vmem:[#allocation2 + $0xd0] sm:$0xff] }
  0x18   :  { %v421_v12 = vpop.eup %420  ;;  %329 = vst [vmem:[#allocation5 + $0x20] sm:$0xff] %v279_v57  ;;  %v281_v62 = vadd.f32 %v231_v2, %v592_v10  ;;  %v233_v8 = vadd.f32 %v615_v18, %v133_v58  ;;  %v135_v63 = vmul.f32 0.5, %v419_v11  ;;  %432 = vtanh.f32 %v654_v33  ;;  %v748_v2 = vld [vmem:[#allocation2 + $0xd8] sm:$0xff] }
  0x19   :  { %v423_v13 = vpop.eup %422  ;;  %330 = vst [vmem:[#allocation5 + $0x28] sm:$0xff] %v280_v59  ;;  %v282_v3 = vadd.f32 %v232_v4, %v604_v14  ;;  %v234_v9 = vadd.f32 %v618_v19, %v134_v61  ;;  %v136_v35 = vmul.f32 0.5, %v421_v12  ;;  %434 = vtanh.f32 %v656_v34  ;;  %v756_v61 = vld [vmem:[#allocation2 + $0xe0] sm:$0xff] }
  0x1a   :  { %v425_v17 = vpop.eup %424  ;;  %331 = vst [vmem:[#allocation5 + $0x30] sm:$0xff] %v281_v62  ;;  %v283_v41 = vadd.f32 %v233_v8, %v606_v15  ;;  %v235_v10 = vadd.f32 %v628_v23, %v135_v63  ;;  %v137_v42 = vmul.f32 0.5, %v423_v13  ;;  %436 = vtanh.f32 %v668_v39 }
  0x1b   :  { %v427_v18 = vpop.eup %426  ;;  %332 = vst [vmem:[#allocation5 + $0x38] sm:$0xff] %v282_v3  ;;  %v284_v5 = vadd.f32 %v234_v9, %v608_v16  ;;  %v236_v14 = vadd.f32 %v631_v24, %v136_v35  ;;  %v138_v47 = vmul.f32 0.5, %v425_v17  ;;  %438 = vtanh.f32 %v670_v40  ;;  %v738_v24 = vld [vmem:[#allocation2 + $0xc8] sm:$0xff] }
  0x1c   :  { %v429_v19 = vpop.eup %428  ;;  %333 = vst [vmem:[#allocation5 + $0x40] sm:$0xff] %v283_v41  ;;  %v285_v48 = vadd.f32 %v235_v10, %v620_v20  ;;  %v237_v15 = vadd.f32 %v634_v25, %v137_v42  ;;  %v139_v52 = vmul.f32 0.5, %v427_v18  ;;  %440 = vtanh.f32 %v679_v45  ;;  %v764_v3 = vld [vmem:[#allocation2 + $0xe8] sm:$0xff]  ;;  %v772_v42 = vld [vmem:[#allocation2 + $0xf0] sm:$0xff] }
  0x1d   :  { %v431_v23 = vpop.eup %430  ;;  %334 = vst [vmem:[#allocation5 + $0x48] sm:$0xff] %v284_v5  ;;  %v286_v0 = vadd.f32 %v236_v14, %v622_v21  ;;  %v238_v16 = vadd.f32 %v644_v29, %v138_v47  ;;  %v140_v6 = vmul.f32 0.5, %v429_v19  ;;  %442 = vtanh.f32 %v681_v46 }
  0x1e   :  { %v433_v53 = vpop.eup %432  ;;  %335 = vst [vmem:[#allocation5 + $0x50] sm:$0xff] %v285_v48  ;;  %v287_v20 = vadd.f32 %v237_v15, %v624_v22  ;;  %v239_v25 = vadd.f32 %v647_v30, %v139_v52  ;;  %v141_v1 = vmul.f32 0.5, %v431_v23  ;;  %444 = vtanh.f32 %v690_v51  ;;  %v780_v48 = vld [vmem:[#allocation2 + $0xf8] sm:$0xff]  ;;  %v785_v23 = vld [vmem:[#allocation2 + $0x100] sm:$0xff] }
  0x1f   :  { %v435_v7 = vpop.eup %434  ;;  %336 = vst [vmem:[#allocation5 + $0x58] sm:$0xff] %v286_v0  ;;  %v288_v21 = vadd.f32 %v238_v16, %v636_v26  ;;  %v240_v29 = vadd.f32 %v650_v31, %v140_v6  ;;  %v142_v57 = vmul.f32 0.5, %v433_v53  ;;  %446 = vtanh.f32 %v696_v56  ;;  %v789_v6 = vld [vmem:[#allocation2 + $0x108] sm:$0xff] }
  0x20   :  { %v437_v58 = vpop.eup %436  ;;  %337 = vst [vmem:[#allocation5 + $0x60] sm:$0xff] %v287_v20  ;;  %v289_v22 = vadd.f32 %v239_v25, %v638_v27  ;;  %v241_v30 = vadd.f32 %v660_v36, %v141_v1  ;;  %v143_v11 = vmul.f32 0.5, %v435_v7  ;;  %448 = vtanh.f32 %v738_v24  ;;  %v794_v25 = vld [vmem:[#allocation2 + $0x110] sm:$0xff] }
  0x21   :  { %v439_v59 = vpop.eup %438  ;;  %338 = vst [vmem:[#allocation5 + $0x68] sm:$0xff] %v288_v21  ;;  %v290_v26 = vadd.f32 %v240_v29, %v640_v28  ;;  %v242_v31 = vadd.f32 %v663_v37, %v142_v57  ;;  %v144_v4 = vmul.f32 0.5, %v437_v58  ;;  %450 = vtanh.f32 %v743_v54  ;;  %v798_v21 = vld [vmem:[#allocation2 + $0x118] sm:$0xff] }
  0x22   :  { %v441_v12 = vpop.eup %440  ;;  %339 = vst [vmem:[#allocation5 + $0x70] sm:$0xff] %v289_v22  ;;  %v291_v27 = vadd.f32 %v241_v30, %v652_v32  ;;  %v243_v36 = vadd.f32 %v666_v38, %v143_v11  ;;  %v145_v62 = vmul.f32 0.5, %v439_v59  ;;  %452 = vtanh.f32 %v748_v2  ;;  %v804_v22 = vld [vmem:[#allocation2 + $0x120] sm:$0xff]  ;;  %v808_v59 = vld [vmem:[#allocation2 + $0x128] sm:$0xff] }
  0x23   :  { %v443_v8 = vpop.eup %442  ;;  %340 = vst [vmem:[#allocation5 + $0x78] sm:$0xff] %v290_v26  ;;  %v292_v28 = vadd.f32 %v242_v31, %v654_v33  ;;  %v244_v37 = vadd.f32 %v674_v43, %v144_v4  ;;  %v146_v63 = vmul.f32 0.5, %v441_v12  ;;  %v200_v13 = vmul.f32 0.25, %v738_v24  ;;  %v814_v12 = vld [vmem:[#allocation2 + $0x130] sm:$0xff] }
  0x24   :  { %v445_v9 = vpop.eup %444  ;;  %341 = vst [vmem:[#allocation5 + $0x80] sm:$0xff] %v291_v27  ;;  %v293_v32 = vadd.f32 %v243_v36, %v656_v34  ;;  %v245_v38 = vadd.f32 %v677_v44, %v145_v62  ;;  %v147_v35 = vmul.f32 0.5, %v443_v8  ;;  %454 = vtanh.f32 %v756_v61  ;;  %v818_v62 = vld [vmem:[#allocation2 + $0x138] sm:$0xff] }
  0x25   :  { %v447_v17 = vpop.eup %446  ;;  %342 = vst [vmem:[#allocation5 + $0x88] sm:$0xff] %v292_v28  ;;  %v294_v33 = vadd.f32 %v244_v37, %v668_v39  ;;  %v246_v43 = vadd.f32 %v685_v49, %v146_v63  ;;  %v148_v41 = vmul.f32 0.5, %v445_v9  ;;  %v201_v10 = vmul.f32 0.25, %v743_v54 }
  0x26   :  { %v449_v18 = vpop.eup %448  ;;  %343 = vst [vmem:[#allocation5 + $0x90] sm:$0xff] %v293_v32  ;;  %v295_v34 = vadd.f32 %v245_v38, %v670_v40  ;;  %v247_v44 = vadd.f32 %v688_v50, %v147_v35  ;;  %v149_v5 = vmul.f32 0.5, %v447_v17  ;;  %456 = vtanh.f32 %v764_v3  ;;  %v828_v35 = vld [vmem:[#allocation2 + $0x148] sm:$0xff] }
  0x27   :  { %v451_v14 = vpop.eup %450  ;;  %344 = vst [vmem:[#allocation5 + $0x98] sm:$0xff] %v294_v33  ;;  %v296_v39 = vadd.f32 %v246_v43, %v679_v45  ;;  %v248_v49 = vadd.f32 %v694_v55, %v148_v41  ;;  %v150_v47 = vmul.f32 0.5, %v449_v18  ;;  %v202_v19 = vmul.f32 0.25, %v748_v2 }
  0x28   :  { %v453_v15 = vpop.eup %452  ;;  %345 = vst [vmem:[#allocation5 + $0xa0] sm:$0xff] %v295_v34  ;;  %v297_v40 = vadd.f32 %v247_v44, %v681_v46  ;;  %v249_v50 = vadd.f32 %v700_v60, %v149_v5  ;;  %v151_v52 = vmul.f32 0.5, %v451_v14  ;;  %458 = vtanh.f32 %v772_v42  ;;  %v837_v5 = vld [vmem:[#allocation2 + $0x158] sm:$0xff] }
  0x29   :  { %346 = vst [vmem:[#allocation5 + $0xa8] sm:$0xff] %v296_v39  ;;  %v298_v45 = vadd.f32 %v248_v49, %v690_v51  ;;  %v250_v55 = vadd.f32 %v200_v13, %v150_v47  ;;  %v152_v0 = vmul.f32 0.5, %v453_v15  ;;  %v203_v16 = vmul.f32 0.25, %v756_v61  ;;  %v824_v13 = vld [vmem:[#allocation2 + $0x140] sm:$0xff] }
  0x2a   :  { %v455_v53 = vpop.eup %454  ;;  %347 = vst [vmem:[#allocation5 + $0xb0] sm:$0xff] %v297_v40  ;;  %v299_v46 = vadd.f32 %v249_v50, %v696_v56  ;;  %v251_v20 = vadd.f32 %v201_v10, %v151_v52  ;;  %v204_v60 = vmul.f32 0.25, %v764_v3  ;;  %460 = vtanh.f32 %v780_v48  ;;  %v833_v10 = vld [vmem:[#allocation2 + $0x150] sm:$0xff] }
  0x2b   :  { %348 = vst [vmem:[#allocation5 + $0xb8] sm:$0xff] %v298_v45  ;;  %v300_v51 = vadd.f32 %v250_v55, %v738_v24  ;;  %v252_v1 = vadd.f32 %v202_v19, %v152_v0  ;;  %v153_v7 = vmul.f32 0.5, %v455_v53  ;;  %462 = vtanh.f32 %v785_v23 }
  0x2c   :  { %v457_v29 = vpop.eup %456  ;;  %349 = vst [vmem:[#allocation5 + $0xc0] sm:$0xff] %v299_v46  ;;  %v301_v56 = vadd.f32 %v251_v20, %v743_v54  ;;  %v205_v57 = vmul.f32 0.25, %v772_v42  ;;  %v206_v58 = vmul.f32 0.25, %v780_v48  ;;  %464 = vtanh.f32 %v789_v6 }
  0x2d   :  { %350 = vst [vmem:[#allocation5 + $0xc8] sm:$0xff] %v300_v51  ;;  %v302_v24 = vadd.f32 %v252_v1, %v748_v2  ;;  %v253_v30 = vadd.f32 %v203_v16, %v153_v7  ;;  %v154_v11 = vmul.f32 0.5, %v457_v29  ;;  %466 = vtanh.f32 %v794_v25 }
  0x2e   :  { %v459_v26 = vpop.eup %458  ;;  %351 = vst [vmem:[#allocation5 + $0xd0] sm:$0xff] %v301_v56  ;;  %v207_v54 = vmul.f32 0.25, %v785_v23  ;;  %v208_v31 = vmul.f32 0.25, %v789_v6  ;;  %v209_v4 = vmul.f32 0.25, %v794_v25  ;;  %468 = vtanh.f32 %v798_v21 }
  0x2f   :  { %352 = vst [vmem:[#allocation5 + $0xd8] sm:$0xff] %v302_v24  ;;  %v303_v2 = vadd.f32 %v253_v30, %v756_v61  ;;  %v254_v27 = vadd.f32 %v204_v60, %v154_v11  ;;  %v155_v36 = vmul.f32 0.5, %v459_v26  ;;  %470 = vtanh.f32 %v804_v22  ;;  %v849_v60 = vld [vmem:[#allocation2 + $0x168] sm:$0xff]  ;;  %v855_v24 = vld [vmem:[#allocation2 + $0x170] sm:$0xff] }
  0x30   :  { %v461_v8 = vpop.eup %460  ;;  %v210_v28 = vmul.f32 0.25, %v798_v21  ;;  %v211_v37 = vmul.f32 0.25, %v804_v22  ;;  %472 = vtanh.f32 %v808_v59  ;;  %v212_v63 = vmul.f32 0.25, %v808_v59 }
  0x31   :  { %v463_v9 = vpop.eup %462  ;;  %353 = vst [vmem:[#allocation5 + $0xe0] sm:$0xff] %v303_v2  ;;  %v304_v61 = vadd.f32 %v254_v27, %v764_v3  ;;  %v255_v32 = vadd.f32 %v205_v57, %v155_v36  ;;  %v156_v38 = vmul.f32 0.5, %v461_v8  ;;  %474 = vtanh.f32 %v814_v12  ;;  %v72_v27 = vld [vmem:[#allocation2 + $0x178] sm:$0xff] }
  0x32   :  { %v465_v17 = vpop.eup %464  ;;  %v157_v33 = vmul.f32 0.5, %v463_v9  ;;  %v213_v43 = vmul.f32 0.25, %v814_v12  ;;  %476 = vtanh.f32 %v818_v62  ;;  %v214_v41 = vmul.f32 0.25, %v818_v62 }
  0x33   :  { %v467_v18 = vpop.eup %466  ;;  %354 = vst [vmem:[#allocation5 + $0xe8] sm:$0xff] %v304_v61  ;;  %v305_v3 = vadd.f32 %v255_v32, %v772_v42  ;;  %v256_v34 = vadd.f32 %v206_v58, %v156_v38  ;;  %v158_v44 = vmul.f32 0.5, %v465_v17  ;;  %478 = vtanh.f32 %v824_v13  ;;  %v843_v42 = vld [vmem:[#allocation2 + $0x160] sm:$0xff]  ;;  %v74_v32 = vld [vmem:[#allocation2 + $0x188] sm:$0xff] }
  0x34   :  { %v469_v14 = vpop.eup %468  ;;  %v257_v39 = vadd.f32 %v207_v54, %v157_v33  ;;  %v159_v49 = vmul.f32 0.5, %v467_v18  ;;  %v215_v47 = vmul.f32 0.25, %v824_v13  ;;  %480 = vtanh.f32 %v828_v35 }
  0x35   :  { %v471_v19 = vpop.eup %470  ;;  %355 = vst [vmem:[#allocation5 + $0xf0] sm:$0xff] %v305_v3  ;;  %v306_v15 = vadd.f32 %v256_v34, %v780_v48  ;;  %v258_v40 = vadd.f32 %v208_v31, %v158_v44  ;;  %v160_v50 = vmul.f32 0.5, %v469_v14  ;;  %482 = vtanh.f32 %v833_v10 }
  0x36   :  { %v473_v52 = vpop.eup %472  ;;  %v307_v45 = vadd.f32 %v257_v39, %v785_v23  ;;  %v259_v55 = vadd.f32 %v209_v4, %v159_v49  ;;  %v161_v0 = vmul.f32 0.5, %v471_v19  ;;  %484 = vtanh.f32 %v837_v5 }
  0x37   :  { %v475_v16 = vpop.eup %474  ;;  %356 = vst [vmem:[#allocation5 + $0xf8] sm:$0xff] %v306_v15  ;;  %v308_v53 = vadd.f32 %v258_v40, %v789_v6  ;;  %v260_v46 = vadd.f32 %v210_v28, %v160_v50  ;;  %v162_v20 = vmul.f32 0.5, %v473_v52  ;;  %v216_v48 = vmul.f32 0.25, %v828_v35 }
  0x38   :  { %v477_v51 = vpop.eup %476  ;;  %357 = vst [vmem:[#allocation5 + $0x100] sm:$0xff] %v307_v45  ;;  %v309_v1 = vadd.f32 %v259_v55, %v794_v25  ;;  %v261_v7 = vadd.f32 %v211_v37, %v161_v0  ;;  %v163_v23 = vmul.f32 0.5, %v475_v16  ;;  %486 = vtanh.f32 %v843_v42 }
  0x39   :  { %v479_v29 = vpop.eup %478  ;;  %358 = vst [vmem:[#allocation5 + $0x108] sm:$0xff] %v308_v53  ;;  %v310_v56 = vadd.f32 %v260_v46, %v798_v21  ;;  %v262_v57 = vadd.f32 %v212_v63, %v162_v20  ;;  %v164_v6 = vmul.f32 0.5, %v477_v51  ;;  %v217_v58 = vmul.f32 0.25, %v833_v10 }
  0x3a   :  { %v481_v30 = vpop.eup %480  ;;  %359 = vst [vmem:[#allocation5 + $0x110] sm:$0xff] %v309_v1  ;;  %v311_v11 = vadd.f32 %v261_v7, %v804_v22  ;;  %v263_v26 = vadd.f32 %v213_v43, %v163_v23  ;;  %v165_v25 = vmul.f32 0.5, %v479_v29  ;;  %488 = vtanh.f32 %v849_v60  ;;  %v73_v22 = vld [vmem:[#allocation2 + $0x180] sm:$0xff] }
  0x3b   :  { %v483_v54 = vpop.eup %482  ;;  %360 = vst [vmem:[#allocation5 + $0x118] sm:$0xff] %v310_v56  ;;  %v312_v31 = vadd.f32 %v262_v57, %v808_v59  ;;  %v264_v4 = vadd.f32 %v214_v41, %v164_v6  ;;  %v166_v21 = vmul.f32 0.5, %v481_v30  ;;  %v218_v2 = vmul.f32 0.25, %v837_v5 }
  0x3c   :  { %v485_v36 = vpop.eup %484  ;;  %361 = vst [vmem:[#allocation5 + $0x120] sm:$0xff] %v311_v11  ;;  %v313_v8 = vadd.f32 %v263_v26, %v814_v12  ;;  %v265_v28 = vadd.f32 %v215_v47, %v165_v25  ;;  %v167_v37 = vmul.f32 0.5, %v483_v54  ;;  %490 = vtanh.f32 %v855_v24 }
  0x3d   :  { %362 = vst [vmem:[#allocation5 + $0x128] sm:$0xff] %v312_v31  ;;  %v314_v63 = vadd.f32 %v264_v4, %v818_v62  ;;  %v266_v9 = vadd.f32 %v216_v48, %v166_v21  ;;  %v168_v61 = vmul.f32 0.5, %v485_v36  ;;  %v219_v59 = vmul.f32 0.25, %v843_v42 }
  0x3e   :  { %v487_v38 = vpop.eup %486  ;;  %363 = vst [vmem:[#allocation5 + $0x130] sm:$0xff] %v313_v8  ;;  %v315_v17 = vadd.f32 %v265_v28, %v824_v13  ;;  %v267_v33 = vadd.f32 %v217_v58, %v167_v37  ;;  %v220_v12 = vmul.f32 0.25, %v849_v60  ;;  %492 = vtanh.f32 %v72_v27 }
  0x3f   :  { %364 = vst [vmem:[#allocation5 + $0x138] sm:$0xff] %v314_v63  ;;  %v316_v43 = vadd.f32 %v266_v9, %v828_v35  ;;  %v268_v41 = vadd.f32 %v218_v2, %v168_v61  ;;  %v169_v18 = vmul.f32 0.5, %v487_v38  ;;  %494 = vtanh.f32 %v73_v22 }
  0x40   :  { %v489_v62 = vpop.eup %488  ;;  %365 = vst [vmem:[#allocation5 + $0x140] sm:$0xff] %v315_v17  ;;  %v317_v3 = vadd.f32 %v267_v33, %v833_v10  ;;  %496 = vtanh.f32 %v74_v32  ;;  %v221_v14 = vmul.f32 0.25, %v855_v24  ;;  %v222_v19 = vmul.f32 0.25, %v72_v27 }
  0x41   :  { %366 = vst [vmem:[#allocation5 + $0x148] sm:$0xff] %v316_v43  ;;  %v318_v34 = vadd.f32 %v268_v41, %v837_v5  ;;  %v269_v44 = vadd.f32 %v219_v59, %v169_v18  ;;  %v170_v13 = vmul.f32 0.5, %v489_v62  ;;  %v223_v40 = vmul.f32 0.25, %v73_v22 }
  0x42   :  { %v491_v39 = vpop.eup %490  ;;  %367 = vst [vmem:[#allocation5 + $0x150] sm:$0xff] %v317_v3  ;;  %v224_v45 = vmul.f32 0.25, %v74_v32 }
  0x43   :  { %368 = vst [vmem:[#allocation5 + $0x158] sm:$0xff] %v318_v34  ;;  %v319_v35 = vadd.f32 %v269_v44, %v843_v42  ;;  %v270_v49 = vadd.f32 %v220_v12, %v170_v13  ;;  %v171_v47 = vmul.f32 0.5, %v491_v39 }
  0x44   :  { %v493_v15 = vpop.eup %492 }
  0x45   :  { %v495_v50 = vpop.eup %494  ;;  %369 = vst [vmem:[#allocation5 + $0x160] sm:$0xff] %v319_v35  ;;  %v320_v10 = vadd.f32 %v270_v49, %v849_v60  ;;  %v271_v52 = vadd.f32 %v221_v14, %v171_v47  ;;  %v172_v5 = vmul.f32 0.5, %v493_v15 }
  0x46   :  { %v497_v55 = vpop.eup %496  ;;  %v173_v0 = vmul.f32 0.5, %v495_v50 }
  0x47   :  { %370 = vst [vmem:[#allocation5 + $0x168] sm:$0xff] %v320_v10  ;;  %v321_v16 = vadd.f32 %v271_v52, %v855_v24  ;;  %v272_v53 = vadd.f32 %v222_v19, %v172_v5  ;;  %v174_v46 = vmul.f32 0.5, %v497_v55 }
  0x48   :  { %v273_v42 = vadd.f32 %v223_v40, %v173_v0 }
  0x49   :  { %371 = vst [vmem:[#allocation5 + $0x170] sm:$0xff] %v321_v16  ;;  %v322_v20 = vadd.f32 %v272_v53, %v72_v27  ;;  %v274_v48 = vadd.f32 %v224_v45, %v174_v46 }
  0x4a   :  { %v323_v60 = vadd.f32 %v273_v42, %v73_v22 }
  0x4b   :  { %372 = vst [vmem:[#allocation5 + $0x178] sm:$0xff] %v322_v20  ;;  %v324_v51 = vadd.f32 %v274_v48, %v74_v32 }
  0x4c   :  { %373 = vst [vmem:[#allocation5 + $0x180] sm:$0xff] %v323_v60 }
  0x4d   :  { %374 = vst [vmem:[#allocation5 + $0x188] sm:$0xff] %v324_v51 }
  0x4e   :  { %387 = dma.vmem_to_hbm [thread:$0]  %s380_s13, 6400, %s382_s16, [#allocation4], %s551_s11, %s551_s11, %s552_s12  }
  0x4f   :  { %548 = dma.done.wait [#allocation4], 6400  }
  0x50   :  { %549 = vsyncadd [#allocation4], 4294960896 }
  0x51   :  { %392 = vsyncpa [#allocation3], 1 }
  0x52   :  { %393 = vsyncpa [#allocation4], 1 }

</bundles_post_ra>
